<compile_context>
chip_gen: v6e
topology: v6e:2x2x1
jax: 0.10.0
libtpu: 0.0.40
codegen_flags: <defaults>
</compile_context>

<pallas_src>
import functools

import jax
import jax.numpy as jnp
from jax.experimental import pallas as pl
from jax.experimental.pallas import tpu as pltpu


_ONEHOT_MAX_VOCAB = 2048        # MXU one-hot gather up to this vocab size
_ONEHOT_VOCAB_CHUNK = 512       # bound the (T, Vc) one-hot temp
_DEFAULT_TILE_TOKENS = 256      # tokens gathered per grid step
_GATHER_WINDOW = 8              # outstanding row DMAs in the HBM-gather fallback
_ROW_GROUP = 8                  # rows per dense store in the row-copy path
_LANE = 128
_SUBLANE = 8


def _round_up(x, m):
    return ((x + m - 1) // m) * m


def _vmem_capacity_bytes():
    """Physical per-core VMEM (128 MiB on v5e/v6e, 64 MiB on v7x)."""
    try:
        cap = int(pltpu.get_tpu_info().vmem_capacity_bytes)
        if cap > 0:
            return cap
    except Exception:
        pass
    return 64 << 20   # conservative default: v7x per-TensorCore VMEM


def _choose_tile(n_tok, tile_tokens):
    T = min(_round_up(tile_tokens, _SUBLANE), _round_up(n_tok, _SUBLANE))
    # shrink T so there are >=2 tiles when possible (keeps both v7x TCs busy)
    while T > _SUBLANE and _round_up(n_tok, T) // T < 2:
        T = _round_up(T // 2, _SUBLANE)
    return T


# ---------------------------------------------------------------------------
# Path 1: small vocab, table resident in VMEM, MXU one-hot gather (vocab-chunked).
# ---------------------------------------------------------------------------
def _onehot_gather_kernel(ids_ref, table_ref, out_ref, *, vocab_chunk, precision):
    """out[t, :] = table[ids[t], :] via (T, Vc) one-hot x (Vc, D) MXU matmuls."""
    T, D = out_ref.shape
    V = table_ref.shape[0]
    ids = ids_ref[...]                                           # (T, 1) int32
    acc = jnp.zeros((T, D), jnp.float32)
    for c in range(0, V, vocab_chunk):                           # static vocab chunking
        vc = min(vocab_chunk, V - c)
        iota = jax.lax.broadcasted_iota(jnp.int32, (T, vc), 1) + c
        onehot = (ids == iota).astype(table_ref.dtype)           # (T, vc)
        acc = acc + jnp.dot(onehot, table_ref[pl.ds(c, vc), :],
                            preferred_element_type=jnp.float32,
                            precision=precision)
    out_ref[...] = acc.astype(out_ref.dtype)


# ---------------------------------------------------------------------------
# Path 2: medium vocab, table resident in VMEM, grouped in-VMEM row copies.
# ---------------------------------------------------------------------------
def _rowcopy_gather_kernel(ids_ref, table_ref, out_ref):
    """out[t, :] = table[ids[tile*T + t], :]; 8 rows per dense (8, D) store."""
    T = out_ref.shape[0]
    G = _ROW_GROUP
    base = pl.program_id(0) * T

    def group(g, carry):
        start = pl.multiple_of(g * G, G)
        rows = [table_ref[pl.ds(ids_ref[base + start + j], 1), :] for j in range(G)]
        out_ref[pl.ds(start, G), :] = jnp.concatenate(rows, axis=0)
        return carry

    jax.lax.fori_loop(0, T // G, group, 0, unroll=True)


# ---------------------------------------------------------------------------
# Path 3: table too large for VMEM — manual HBM row gather with a window of
# outstanding per-row DMAs into a (T, D) staging tile, one dense writeback.
# ---------------------------------------------------------------------------
def _hbm_gather_kernel(ids_ref, table_hbm, out_ref, stage_ref, sems):
    T = out_ref.shape[0]
    W = sems.shape[0]                       # outstanding row fetches
    base = pl.program_id(0) * T

    def issue(t):
        row = ids_ref[base + t]
        pltpu.make_async_copy(
            table_hbm.at[pl.ds(row, 1), :],
            stage_ref.at[pl.ds(t, 1), :],
            sems.at[t % W],
        ).start()

    for t in range(W):                      # prime W outstanding row DMAs
        issue(t)

    @pl.loop(0, T)
    def _(t):
        # wait for row t (src slice only matters for the transfer size)
        pltpu.make_async_copy(
            table_hbm.at[pl.ds(0, 1), :],
            stage_ref.at[pl.ds(t, 1), :],
            sems.at[t % W],
        ).wait()

        @pl.when(t + W < T)
        def _():
            issue(t + W)

    out_ref[...] = stage_ref[...]           # single dense (T, D) writeback


# ---------------------------------------------------------------------------
# Drivers
# ---------------------------------------------------------------------------
def _embed_resident_table(ids, table, tile_tokens, vmem_cap):
    n_tok = ids.shape[0]
    V, D = table.shape
    itemsize = jnp.dtype(table.dtype).itemsize

    T = _choose_tile(n_tok, tile_tokens)
    n_pad = _round_up(n_tok, T)
    if n_pad != n_tok:
        ids = jnp.pad(ids, (0, n_pad - n_tok))      # pad with a valid row id (0)
    n_tiles = n_pad // T

    onehot_path = V <= _ONEHOT_MAX_VOCAB
    vocab_chunk = min(_ONEHOT_VOCAB_CHUNK, V)
    required = (2 * V * D * itemsize                 # table block (may be 2-buffered)
                + 4 * T * D * itemsize               # output tiles (double-buffered)
                + 2 * T * _LANE * 4                  # lane-padded (T, 1) ids tiles
                + (T * vocab_chunk * 4 if onehot_path else 0)   # one-hot temp
                + (2 << 20))                         # internal scratch slack
    vmem_limit = int(min(max(required, 8 << 20), max(vmem_cap - (4 << 20), 8 << 20)))
    compiler_params = pltpu.CompilerParams(
        dimension_semantics=("parallel",),           # disjoint (T, D) tiles
        vmem_limit_bytes=vmem_limit)
    out_shape = jax.ShapeDtypeStruct((n_pad, D), table.dtype)

    if onehot_path:
        ids_col = ids.reshape(n_pad, 1)
        grid_spec = pl.GridSpec(
            grid=(n_tiles,),
            in_specs=[pl.BlockSpec((T, 1), lambda i: (i, 0)),   # token-id column tile
                      pl.BlockSpec((V, D), lambda i: (0, 0))],  # whole table, once
            out_specs=pl.BlockSpec((T, D), lambda i: (i, 0)))

        def run(precision):
            return pl.pallas_call(
                functools.partial(_onehot_gather_kernel,
                                  vocab_chunk=vocab_chunk, precision=precision),
                out_shape=out_shape, grid_spec=grid_spec,
                compiler_params=compiler_params)(ids_col, table)

        try:
            # HIGHEST -> multi-pass f32 MXU matmul: bit-exact row gather.
            out = run(jax.lax.Precision.HIGHEST)
        except Exception:
            # TODO(synk): some Mosaic versions reject non-default dot precision;
            # default f32 matmul is still accurate to well past allclose tolerance.
            out = run(None)
        return out[:n_tok]

    # Medium vocab: ids prefetched to SMEM, grouped row copies from the
    # VMEM-resident table (no per-vocab flops).
    grid_spec = pltpu.PrefetchScalarGridSpec(
        num_scalar_prefetch=1,
        grid=(n_tiles,),
        in_specs=[pl.BlockSpec((V, D), lambda i, ids_ref: (0, 0))],
        out_specs=pl.BlockSpec((T, D), lambda i, ids_ref: (i, 0)))
    out = pl.pallas_call(
        _rowcopy_gather_kernel,
        out_shape=out_shape, grid_spec=grid_spec,
        compiler_params=compiler_params)(ids, table)
    return out[:n_tok]


def _embed_hbm_gather(ids, table, tile_tokens):
    n_tok = ids.shape[0]
    V, D = table.shape
    T = _choose_tile(n_tok, tile_tokens)
    n_pad = _round_up(n_tok, T)
    if n_pad != n_tok:
        ids = jnp.pad(ids, (0, n_pad - n_tok))
    n_tiles = n_pad // T
    W = min(_GATHER_WINDOW, T)

    out = pl.pallas_call(
        _hbm_gather_kernel,
        out_shape=jax.ShapeDtypeStruct((n_pad, D), table.dtype),
        grid_spec=pltpu.PrefetchScalarGridSpec(
            num_scalar_prefetch=1,
            grid=(n_tiles,),
            in_specs=[pl.BlockSpec(memory_space=pl.ANY)],        # table stays in HBM
            out_specs=pl.BlockSpec((T, D), lambda i, ids_ref: (i, 0)),
            scratch_shapes=[pltpu.VMEM((T, D), table.dtype),
                            pltpu.SemaphoreType.DMA((W,))]),
        compiler_params=pltpu.CompilerParams(
            dimension_semantics=("arbitrary",)),
    )(ids, table)
    return out[:n_tok]


def word_embedding_forward(inp, lengths, word_embed, *,
                           tile_tokens=_DEFAULT_TILE_TOKENS,
                           vmem_table_budget_bytes=None):
    """Pallas embedding lookup: out[b, s, :] = word_embed[inp[b, s], :]."""
    del lengths  # forward ignores lengths, same as the PyTorch module
    B, S = inp.shape
    V, D = word_embed.shape
    # TODO(synk): nn.Embedding raises on out-of-range ids; we clamp instead so
    # every path reads a valid row (no silent OOB VMEM/HBM access).
    ids = jnp.clip(inp.reshape(-1).astype(jnp.int32), 0, V - 1)

    # Lane-pad the embedding dim so all (T, D) tiles are lane-dense (unmasked vst).
    D_pad = _round_up(D, _LANE)
    table = word_embed if D_pad == D else jnp.pad(word_embed, ((0, 0), (0, D_pad - D)))

    cap = _vmem_capacity_bytes()
    if vmem_table_budget_bytes is None:
        # ~56 MiB on 128-MiB-VMEM parts (v5e/v6e), ~24 MiB on 64-MiB v7x;
        # conservative because the constant-index table block may be 2-buffered.
        vmem_table_budget_bytes = max(cap // 2 - (8 << 20), 8 << 20)

    table_bytes = V * D_pad * jnp.dtype(table.dtype).itemsize
    if table_bytes <= vmem_table_budget_bytes:
        out_flat = _embed_resident_table(ids, table, tile_tokens, cap)
    else:
        out_flat = _embed_hbm_gather(ids, table, tile_tokens)

    out = out_flat.reshape(B, S, D_pad)
    if D_pad != D:
        out = out[..., :D]
    return out


if __name__ == "__main__":
    key = jax.random.PRNGKey(0)
    k_embed, k_inp, k_embed2, k_inp2 = jax.random.split(key, 4)

    B, S, DIM = 2, 8, 128
    lengths = jnp.full((B,), S, dtype=jnp.int32)  # unused, API parity with PyTorch

    # Path 1: small vocab -> VMEM-resident table + one-hot MXU gather.
    VOCAB = 64
    word_embed = jax.random.normal(k_embed, (VOCAB, DIM), dtype=jnp.float32)
    inp = jax.random.randint(k_inp, (B, S), 0, VOCAB, dtype=jnp.int32)
    out = jax.block_until_ready(word_embedding_forward(inp, lengths, word_embed))
    ref = jnp.take(word_embed, inp, axis=0)
    assert out.shape == (B, S, DIM)
    assert out.dtype == jnp.float32
    assert jnp.allclose(out, ref), "one-hot resident-table path mismatch"

    # Path 2: medium vocab -> VMEM-resident table + grouped row-copy gather.
    VOCAB2 = 4096
    word_embed2 = jax.random.normal(k_embed2, (VOCAB2, DIM), dtype=jnp.float32)
    inp2 = jax.random.randint(k_inp2, (B, S), 0, VOCAB2, dtype=jnp.int32)
    out2 = jax.block_until_ready(word_embedding_forward(inp2, lengths, word_embed2))
    ref2 = jnp.take(word_embed2, inp2, axis=0)
    assert jnp.allclose(out2, ref2), "row-copy resident-table path mismatch"

    # Path 3: force the HBM-gather fallback (manual windowed row DMAs).
    out3 = jax.block_until_ready(
        word_embedding_forward(inp2, lengths, word_embed2,
                               vmem_table_budget_bytes=1024))
    assert jnp.allclose(out3, ref2), "HBM-gather fallback mismatch"

    print("KERNEL_OK")
</pallas_src>

<mosaic_0001>
module attributes {stable_mosaic.version = 11 : i64} {
  func.func @_onehot_gather_kernel(%arg0: i32, %arg1: memref<8x1xi32, #tpu.memory_space<vmem>>, %arg2: memref<64x128xf32, #tpu.memory_space<vmem>>, %arg3: memref<8x128xf32, #tpu.memory_space<vmem>>) attributes {dimension_semantics = [#tpu.dimension_semantics<parallel>], iteration_bounds = array<i64: 2>, scalar_prefetch = 0 : i64, scratch_operands = 0 : i64, tpu.core_type = #tpu.core_type<tc>, window_params = [{transform_indices = @transform_0, window_bounds = array<i64: 8, 1>}, {pipeline_mode = #tpu.pipeline_mode<synchronous>, transform_indices = @transform_1, window_bounds = array<i64: 64, 128>}, {transform_indices = @transform_2, window_bounds = array<i64: 8, 128>}]} {
    %c0 = arith.constant 0 : index
    %c0_0 = arith.constant 0 : index
    %0 = vector.load %arg1[%c0, %c0_0] : memref<8x1xi32, #tpu.memory_space<vmem>>, vector<8x1xi32>
    %cst = arith.constant 0.000000e+00 : f32
    %1 = vector.broadcast %cst : f32 to vector<8x128xf32>
    %2 = tpu.iota {dimensions = array<i32: 1>} : vector<8x64xi32>
    %c0_i32 = arith.constant 0 : i32
    %3 = vector.broadcast %c0_i32 : i32 to vector<8x64xi32>
    %4 = arith.addi %2, %3 : vector<8x64xi32>
    %5 = vector.broadcast %0 : vector<8x1xi32> to vector<8x64xi32>
    %6 = arith.cmpi eq, %5, %4 : vector<8x64xi32>
    %7 = arith.extui %6 : vector<8x64xi1> to vector<8x64xi32>
    %8 = arith.sitofp %7 : vector<8x64xi32> to vector<8x64xf32>
    %c0_1 = arith.constant 0 : index
    %c0_2 = arith.constant 0 : index
    %9 = vector.load %arg2[%c0_1, %c0_2] : memref<64x128xf32, #tpu.memory_space<vmem>>, vector<64x128xf32>
    %cst_3 = arith.constant dense<0.000000e+00> : vector<8x128xf32>
    %10 = tpu.matmul %8, %9, %cst_3 {dimension_numbers = #tpu.dot_dimension_numbers<[1], [0], [0], [1], [0, 0, 1, 1], [], []>, precision = #tpu.contract_precision<fp32>} : vector<8x64xf32>, vector<64x128xf32>, vector<8x128xf32> -> vector<8x128xf32>
    %11 = arith.addf %1, %10 : vector<8x128xf32>
    %c0_4 = arith.constant 0 : index
    %c0_5 = arith.constant 0 : index
    %12 = vector.load %arg3[%c0_4, %c0_5] : memref<8x128xf32, #tpu.memory_space<vmem>>, vector<8x128xf32>
    tpu.vector_store %arg3[%c0_4, %c0_5], %11 {strides = array<i32>} : memref<8x128xf32, #tpu.memory_space<vmem>>, vector<8x128xf32>,
    return
  }
  func.func @transform_0(%arg0: i32) -> (i32, i32) {
    %c0_i32 = arith.constant 0 : i32
    %c0_i32_0 = arith.constant 0 : i32
    return %arg0, %c0_i32 : i32, i32
  }
  func.func @transform_1(%arg0: i32) -> (i32, i32) {
    %c0_i32 = arith.constant 0 : i32
    %c0_i32_0 = arith.constant 0 : i32
    %c0_i32_1 = arith.constant 0 : i32
    return %c0_i32, %c0_i32_0 : i32, i32
  }
  func.func @transform_2(%arg0: i32) -> (i32, i32) {
    %c0_i32 = arith.constant 0 : i32
    %c0_i32_0 = arith.constant 0 : i32
    return %arg0, %c0_i32 : i32, i32
  }
}

module attributes {stable_mosaic.version = 11 : i64} {
  func.func @_onehot_gather_kernel(%arg0: i32, %arg1: memref<8x1xi32, #tpu.memory_space<vmem>>, %arg2: memref<64x128xf32, #tpu.memory_space<vmem>>, %arg3: memref<8x128xf32, #tpu.memory_space<vmem>>) attributes {dimension_semantics = [#tpu.dimension_semantics<parallel>], iteration_bounds = array<i64: 2>, scalar_prefetch = 0 : i64, scratch_operands = 0 : i64, tpu.core_type = #tpu.core_type<tc>, window_params = [{transform_indices = @transform_0, window_bounds = array<i64: 8, 1>}, {pipeline_mode = #tpu.pipeline_mode<synchronous>, transform_indices = @transform_1, window_bounds = array<i64: 64, 128>}, {transform_indices = @transform_2, window_bounds = array<i64: 8, 128>}]} {
    %c0 = arith.constant 0 : index
    %c0_0 = arith.constant 0 : index
    %0 = vector.load %arg1[%c0, %c0_0] : memref<8x1xi32, #tpu.memory_space<vmem>>, vector<8x1xi32>
    %cst = arith.constant 0.000000e+00 : f32
    %1 = vector.broadcast %cst : f32 to vector<8x128xf32>
    %2 = tpu.iota {dimensions = array<i32: 1>} : vector<8x64xi32>
    %c0_i32 = arith.constant 0 : i32
    %3 = vector.broadcast %c0_i32 : i32 to vector<8x64xi32>
    %4 = arith.addi %2, %3 : vector<8x64xi32>
    %5 = vector.broadcast %0 : vector<8x1xi32> to vector<8x64xi32>
    %6 = arith.cmpi eq, %5, %4 : vector<8x64xi32>
    %7 = arith.extui %6 : vector<8x64xi1> to vector<8x64xi32>
    %8 = arith.sitofp %7 : vector<8x64xi32> to vector<8x64xf32>
    %c0_1 = arith.constant 0 : index
    %c0_2 = arith.constant 0 : index
    %9 = vector.load %arg2[%c0_1, %c0_2] : memref<64x128xf32, #tpu.memory_space<vmem>>, vector<64x128xf32>
    %cst_3 = arith.constant dense<0.000000e+00> : vector<8x128xf32>
    %10 = tpu.matmul %8, %9, %cst_3 {dimension_numbers = #tpu.dot_dimension_numbers<[1], [0], [0], [1], [0, 0, 1, 1], [], []>} : vector<8x64xf32>, vector<64x128xf32>, vector<8x128xf32> -> vector<8x128xf32>
    %11 = arith.addf %1, %10 : vector<8x128xf32>
    %c0_4 = arith.constant 0 : index
    %c0_5 = arith.constant 0 : index
    %12 = vector.load %arg3[%c0_4, %c0_5] : memref<8x128xf32, #tpu.memory_space<vmem>>, vector<8x128xf32>
    tpu.vector_store %arg3[%c0_4, %c0_5], %11 {strides = array<i32>} : memref<8x128xf32, #tpu.memory_space<vmem>>, vector<8x128xf32>,
    return
  }
  func.func @transform_0(%arg0: i32) -> (i32, i32) {
    %c0_i32 = arith.constant 0 : i32
    %c0_i32_0 = arith.constant 0 : i32
    return %arg0, %c0_i32 : i32, i32
  }
  func.func @transform_1(%arg0: i32) -> (i32, i32) {
    %c0_i32 = arith.constant 0 : i32
    %c0_i32_0 = arith.constant 0 : i32
    %c0_i32_1 = arith.constant 0 : i32
    return %c0_i32, %c0_i32_0 : i32, i32
  }
  func.func @transform_2(%arg0: i32) -> (i32, i32) {
    %c0_i32 = arith.constant 0 : i32
    %c0_i32_0 = arith.constant 0 : i32
    return %arg0, %c0_i32 : i32, i32
  }
}

</mosaic_0001>

<bundles_post_ra>
// kernel: tpu_custom_call.1
= control target key start
LH: loop header
LB: loop body
LE: loop exit
PB: predicated region body
PF: predicated region fallthrough
CT: control target
= control target key end

     0   :  { %7 = vsyncpa [#allocation3], 0  ;;  %s1448_s0 = inlined_call_operand.vmem [shape: s32[16,1], index: 0, kind: input, shape index: {}]   ;;  %s1449_s1 = inlined_call_operand.hbm [shape: f32[64,128], index: 1, kind: input, shape index: {}]   ;;  %s1450_s2 = inlined_call_operand.hbm [shape: f32[16,128], index: 2, kind: output, shape index: {}]  }
   0x1   :  { %8 = vsyncpa [#allocation4], 0 }
   0x2   :  { %10 = vsyncpa [#allocation4 + $0x1], 0  ;;  %s1152_s9 = smov 0   ;;  %s1154_s10 = smov 0  }
   0x3   :  { %s1156_s11 = smov 0   ;;  %s1158_s12 = smov 0  }
   0x4 LB: > { %s1173_s13 = sadd.s32 4294967295, %s1128_s12   ;;  %s798_s14 = sadd.s32 4294967294, %s1128_s12   ;;  %s1128_s12 = sphi %s1158_s12, %s1458_s12   ;;  %s1124_s11 = sphi %s1156_s11, %s1457_s11   ;;  %s1120_s10 = sphi %s1154_s10, %s1456_s10   ;;  %s1116_s9 = sphi %s1152_s9, %s1455_s9  }
   0x5   : > { %s1177_s15 = sadd.s32 1, %s1128_s12   ;;  %s70_s16 = sadd.s32 1, %s1124_s11 }
   0x6   : > { %s67_s17 = ssub.s32 %s1128_s12, %s1177_s15  ;;  %p80_p0 = scmp.ne.s32.totalorder %s1124_s11, %s1120_s10 }
   0x7   : > { %p68_p1 = scmp.eq.s32.totalorder %s67_s17, 0  ;;  %p81_p2 = scmp.eq.s32.totalorder %s1173_s13, 1 }
   0x8   : > { %p86_p3 = scmp.ne.s32.totalorder %s1120_s10, %s1116_s9  ;;  %p87_p4 = scmp.eq.s32.totalorder %s798_s14, 1 }
   0x9   : > { %s1188_s18 = scalar_select %p68_p1, %s1124_s11, %s70_s16  }
   0xa   : > { %p1190_p5 = por %p81_p2, %p80_p0  ;;  %p1194_p6 = por %p87_p4, %p86_p3 }
   0xb   : > { %p799_p7 = scmp.ge.s32.totalorder %s1128_s12, 1  ;;  %p94_p8 = scmp.lt.s32.totalorder %s1128_s12, 3 }
   0xc   : > { %s1452_s20 = scalar_select %p1194_p6, 1, 0 }
   0xd   : > { %p996_p9 = scmp.eq.s32.totalorder %s1173_s13, 0  ;;  %p1201_p10 = pnand %p799_p7, %p94_p8 }
   0xe   : > { %s1130_s22 = smov [#allocation2]  }
   0xf   : > { %s106_s23 = sshll.u32 %s1130_s22, 4  ;;  %p988_p11 = pneg %p1201_p10  ;;  %s107_s23 = int_to_ptr.vmem [resolvable:$true] %s106_s23 }
  0x10   : > { %s1049_s24 = scalar_lea.vmem %s107_s23, 1024  ;;  %p1057_p3 = scmp.lt.s32.totalorder %s107_s23, %s107_s23 }
  0x11   : > { %p989_p12 = pnand %p996_p9, %p988_p11  ;;  %p1050_p0 = scmp.ne.s32.totalorder %s107_s23, %s1049_s24 }
  0x12   : > { %p1058_p4 = scmp.lt.s32.totalorder %s1049_s24, %s1049_s24 }
  0x13   : > { %p1040_p13 = pneg %p989_p12 }
  0x14   : > { %p1059_p6 = por %p1058_p4, %p1057_p3 }
  0x15   : > { %p1052_p1 = pnand %p1050_p0, %p1040_p13 }
  0x17   : > { %p1053_p2 = pneg %p1052_p1 }
  0x19   : > { %p1060_p7 = pnand %p1059_p6, %p1053_p2 }
  0x1b   : > { %1063 = shalt.err (!%p1060_p7)
}
  0x1c   : > { %s1131_s25 = smov 128   ;;  %s1132_s26 = smov 8  }
  0x1d   : > { %991 = dma.hbm_to_vmem [thread:$0]  (!%p989_p12), %s1449_s1, 1024, %s107_s23, [#allocation3], %s1131_s25, %s1131_s25, %s1132_s26  }
  0x1e   : > { %129 = sbr.rel (%p1201_p10) target bundleno = 422 (0x1a6), region = 28 }
  0x23   : > { %1107 = dma.done.wait (%p996_p9), [#allocation3], 1024  }
  0x24   : > { %1109 = vsyncadd (%p996_p9), [#allocation3], 4294966272  ;;  %p150_p8 = scmp.lt.s32.totalorder %s1173_s13, 1  ;;  %v1133_v0 = vmov 0   ;;  %v1134_v1 = vmov 0.0   ;;  %vm1135_vm0 = vmmov 0   ;;  %v155_v51 = vlaneseq }
  0x25   : > { %1037 = vset.pattern.permute.xlu0 %v1133_v0  ;;  %887 = vmatprep.subr.mxu1 %v1134_v1  ;;  %v170_v3 = vld [vmem:[#allocation2 + $0x38] sm:$0xff]  ;;  %v169_v4 = vld [vmem:[#allocation2 + $0x30] sm:$0xff]  ;;  %v168_v7 = vld [vmem:[#allocation2 + $0x28] sm:$0xff]  ;;  %vm171_vm1 = vcmask 523264   ;;  %s147_s6 = sand.u32 1, %s1120_s10   ;;  %s811_s8 = sshll.u32 %s1173_s13, 7 }
  0x26   : > { %s151_s29 = scalar_select %p150_p8, %s1173_s13, 1  ;;  %868 = vmatprep.subr.mxu0 %v1134_v1  ;;  %903 = vmatprep.mubr.msk.f32.mxu1 %vm1135_vm0, %v1134_v1  ;;  %v1229_v5 = vand.u32 4294901760, %v170_v3  ;;  %v1231_v6 = vand.u32 4294901760, %v169_v4  ;;  %v167_v8 = vld [vmem:[#allocation2 + $0x20] sm:$0xff]  ;;  %v166_v9 = vld [vmem:[#allocation2 + $0x18] sm:$0xff]  ;;  %v1233_v10 = vand.u32 4294901760, %v168_v7 }
  0x27   : > { %884 = vmatprep.mubr.msk.f32.mxu0 %vm1135_vm0, %v1134_v1  ;;  %v1235_v11 = vand.u32 4294901760, %v167_v8  ;;  %v1237_v12 = vand.u32 4294901760, %v166_v9  ;;  %v165_v13 = vld [vmem:[#allocation2 + $0x10] sm:$0xff]  ;;  %v164_v14 = vld [vmem:[#allocation2 + $0x8] sm:$0xff]  ;;  %v163_v15 = vld [vmem:[#allocation2] sm:$0xff]  ;;  %v156_v52 = vand.u32 127, %v155_v51  ;;  %s725_s22 = scalar_lea.hbm %s1450_s2, %s811_s8 }
  0x28   : > { %s805_s30 = sshll.u32 %s151_s29, 3  ;;  %v1240_v16 = vsub.f32 %v170_v3, %v1229_v5  ;;  %v1243_v17 = vsub.f32 %v169_v4, %v1231_v6  ;;  %869 = vmatpush3.msra.mxu0 %v1229_v5  ;;  %v1246_v18 = vand.u32 4294901760, %v165_v13  ;;  %v1248_v19 = vand.u32 4294901760, %v164_v14  ;;  %s804_s7 = sshll.u32 %s147_s6, 3 }
  0x29   : > { %s153_s5 = scalar_lea.vmem %s1448_s0, %s805_s30  ;;  %v1251_v20 = vsub.f32 %v168_v7, %v1233_v10  ;;  %v1254_v21 = vsub.f32 %v167_v8, %v1235_v11  ;;  %v1257_v22 = vsub.f32 %v166_v9, %v1237_v12  ;;  %870 = vmatprep.subr.mxu0 %v1134_v1  ;;  %v1260_v23 = vand.u32 4294901760, %v163_v15  ;;  %s149_s14 = scalar_lea.vmem [#allocation5], %s804_s7 }
  0x2a   : > { %v154_v2 = vld [vmem:[%s153_s5] sm:$0xff]  ;;  %v277_v24 = vand.u32 4294901760, %v1240_v16  ;;  %v284_v25 = vand.u32 4294901760, %v1243_v17  ;;  %v1265_v26 = vsub.f32 %v165_v13, %v1246_v18  ;;  %871 = vmatpush3.msra.mxu0 %v1231_v6  ;;  %v1279_v32 = vsub.f32 %v164_v14, %v1248_v19  ;;  %s727_s16 = sshll.u32 %s149_s14, 4  ;;  %s714_s23 = scalar_lea.sflag [#allocation4], %s147_s6  ;;  %s728_s16 = int_to_ptr.vmem [resolvable:$true] %s727_s16 }
  0x2b   : > { %158 = vperm.xlu0 %1037, %v154_v2   ;;  %v291_v27 = vand.u32 4294901760, %v1251_v20  ;;  %v298_v28 = vand.u32 4294901760, %v1254_v21  ;;  %872 = vmatprep.subr.mxu0 %v1134_v1  ;;  %v305_v31 = vand.u32 4294901760, %v1257_v22  ;;  %v1287_v34 = vsub.f32 %v163_v15, %v1260_v23  ;;  %s1064_s24 = scalar_lea.vmem %s728_s16, 128  ;;  %s1136_s25 = smov [#allocation5]  }
  0x2c   : > { %v278_v29 = vsub.f32 %v1240_v16, %v277_v24  ;;  %v285_v30 = vsub.f32 %v1243_v17, %v284_v25  ;;  %873 = vmatpush3.msra.mxu0 %v1233_v10  ;;  %v312_v38 = vand.u32 4294901760, %v1265_v26  ;;  %v319_v41 = vand.u32 4294901760, %v1279_v32  ;;  %p1065_p6 = scmp.ne.s32.totalorder %s728_s16, %s1064_s24  ;;  %s1068_s26 = sshll.u32 %s1136_s25, 4  ;;  %s1069_s26 = int_to_ptr.vmem [resolvable:$false] %s1068_s26 }
  0x2d   : > { %v292_v33 = vsub.f32 %v1251_v20, %v291_v27  ;;  %874 = vmatprep.subr.mxu0 %v1134_v1  ;;  %v299_v37 = vsub.f32 %v1254_v21, %v298_v28  ;;  %v306_v40 = vsub.f32 %v1257_v22, %v305_v31  ;;  %v326_v44 = vand.u32 4294901760, %v1287_v34  ;;  %s1070_s13 = scalar_lea.vmem %s1069_s26, 256  ;;  %p1071_p11 = scmp.lt.s32.totalorder %s728_s16, %s1069_s26 }
  0x2e   : > { %v279_v35 = vand.u32 4294901760, %v278_v29  ;;  %v286_v36 = vand.u32 4294901760, %v285_v30  ;;  %875 = vmatpush3.msra.mxu0 %v1235_v11  ;;  %v313_v43 = vsub.f32 %v1265_v26, %v312_v38  ;;  %v320_v46 = vsub.f32 %v1279_v32, %v319_v41  ;;  %p1066_p9 = pnand %p1065_p6, %p1190_p5  ;;  %p1072_p12 = scmp.lt.s32.totalorder %s1070_s13, %s1064_s24 }
  0x2f   : > { %876 = vmatprep.subr.mxu0 %v1134_v1  ;;  %v293_v39 = vand.u32 4294901760, %v292_v33  ;;  %v300_v42 = vand.u32 4294901760, %v299_v37  ;;  %v307_v45 = vand.u32 4294901760, %v306_v40  ;;  %v327_v48 = vsub.f32 %v1287_v34, %v326_v44 }
  0x30   : > { %888 = vmatpush3.msra.mxu1 %v279_v35  ;;  %877 = vmatpush3.msra.mxu0 %v1237_v12  ;;  %v314_v47 = vand.u32 4294901760, %v313_v43  ;;  %v321_v49 = vand.u32 4294901760, %v320_v46  ;;  %p1067_p10 = pneg %p1066_p9  ;;  %p1073_p13 = por %p1072_p12, %p1071_p11 }
  0x31   : > { %889 = vmatprep.subr.mxu1 %v1134_v1  ;;  %878 = vmatprep.subr.mxu0 %v1134_v1  ;;  %v328_v50 = vand.u32 4294901760, %v327_v48 }
  0x32   : > { %890 = vmatpush3.msra.mxu1 %v286_v36  ;;  %879 = vmatpush3.msra.mxu0 %v1246_v18  ;;  %p1074_p0 = pnand %p1073_p13, %p1067_p10 }
  0x33   : > { %891 = vmatprep.subr.mxu1 %v1134_v1  ;;  %880 = vmatprep.subr.mxu0 %v1134_v1 }
  0x34   : > { %892 = vmatpush3.msra.mxu1 %v293_v39  ;;  %881 = vmatpush3.msra.mxu0 %v1248_v19 }
  0x35   : > { %893 = vmatprep.subr.mxu1 %v1134_v1  ;;  %882 = vmatprep.subr.mxu0 %v1134_v1 }
  0x36   : > { %894 = vmatpush3.msra.mxu1 %v300_v42  ;;  %883 = vmatpush3.msra.mxu0 %v1260_v23 }
  0x37   : > { %895 = vmatprep.subr.mxu1 %v1134_v1  ;;  %906 = vmatprep.subr.mxu0 %v1134_v1 }
  0x38   : > { %896 = vmatpush3.msra.mxu1 %v307_v45 }
  0x39   : > { %897 = vmatprep.subr.mxu1 %v1134_v1 }
  0x3a   : > { %898 = vmatpush3.msra.mxu1 %v314_v47 }
  0x3b   : > { %899 = vmatprep.subr.mxu1 %v1134_v1 }
  0x3c   : > { %900 = vmatpush3.msra.mxu1 %v321_v49 }
  0x3d   : > { %901 = vmatprep.subr.mxu1 %v1134_v1 }
  0x3e   : > { %902 = vmatpush3.msra.mxu1 %v328_v50 }
  0x3f   : > { %925 = vmatprep.subr.mxu1 %v1134_v1 }
  0xa6   : > { %v159_v53 = vpop.permute.xlu0 %158 }
  0xa7   : > { %vm160_vm2 = vcmp.eq.s32.totalorder %v159_v53, %v156_v52 }
  0xa8   : > { %v1326_v54 = vsel %vm160_vm2, 1.0, %v1134_v1 }
  0xa9   : > { %v173_v55 = vsel %vm171_vm1, %v1326_v54, 0  ;;  %904 = vmatmul.mubr.msk.f32.vlgmr.msra.gmra.mxu1 %vm171_vm1, %v1326_v54 }
  0xaa   : > { %v249_v56 = vsub.f32 %v173_v55, %v173_v55  ;;  %926 = vmatpush3.msra.mxu1 %v1229_v5  ;;  %941 = vmatprep.mubr.msk.f32.mxu1 %vm1135_vm0, %v1134_v1 }
  0xab   : > { %927 = vmatprep.subr.mxu1 %v1134_v1 }
  0xac   : > { %928 = vmatpush3.msra.mxu1 %v1231_v6  ;;  %v250_v57 = vand.u32 4294901760, %v249_v56 }
  0xad   : > { %929 = vmatprep.subr.mxu1 %v1134_v1 }
  0xae   : > { %930 = vmatpush3.msra.mxu1 %v1233_v10  ;;  %v251_v58 = vsub.f32 %v249_v56, %v250_v57 }
  0xaf   : > { %931 = vmatprep.subr.mxu1 %v1134_v1 }
  0xb0   : > { %932 = vmatpush3.msra.mxu1 %v1235_v11  ;;  %v252_v59 = vand.u32 4294901760, %v251_v58 }
  0xb1   : > { %933 = vmatprep.subr.mxu1 %v1134_v1 }
  0xb2   : > { %934 = vmatpush3.msra.mxu1 %v1237_v12  ;;  %885 = vmatmul.mubr.f32.vlgmr.msra.gmra.mxu0 %v252_v59 }
  0xb3   : > { %907 = vmatpush3.msra.mxu0 %v1240_v16  ;;  %935 = vmatprep.subr.mxu1 %v1134_v1 }
  0xb4   : > { %908 = vmatprep.subr.mxu0 %v1134_v1  ;;  %936 = vmatpush3.msra.mxu1 %v1246_v18 }
  0xb5   : > { %909 = vmatpush3.msra.mxu0 %v1243_v17  ;;  %937 = vmatprep.subr.mxu1 %v1134_v1 }
  0xb6   : > { %910 = vmatprep.subr.mxu0 %v1134_v1  ;;  %938 = vmatpush3.msra.mxu1 %v1248_v19 }
  0xb7   : > { %911 = vmatpush3.msra.mxu0 %v1251_v20  ;;  %939 = vmatprep.subr.mxu1 %v1134_v1 }
  0xb8   : > { %912 = vmatprep.subr.mxu0 %v1134_v1  ;;  %940 = vmatpush3.msra.mxu1 %v1260_v23 }
  0xb9   : > { %913 = vmatpush3.msra.mxu0 %v1254_v21  ;;  %942 = vmatmul.mubr.f32.vlgmr.msra.gmra.mxu1 %v250_v57 }
  0xba   : > { %963 = vmatprep.subr.mxu1 %v1134_v1  ;;  %914 = vmatprep.subr.mxu0 %v1134_v1 }
  0xbb   : > { %964 = vmatpush3.msra.mxu1 %v1229_v5  ;;  %915 = vmatpush3.msra.mxu0 %v1257_v22 }
  0xbc   : > { %965 = vmatprep.subr.mxu1 %v1134_v1  ;;  %916 = vmatprep.subr.mxu0 %v1134_v1 }
  0xbd   : > { %966 = vmatpush3.msra.mxu1 %v1231_v6  ;;  %917 = vmatpush3.msra.mxu0 %v1265_v26 }
  0xbe   : > { %967 = vmatprep.subr.mxu1 %v1134_v1  ;;  %918 = vmatprep.subr.mxu0 %v1134_v1 }
  0xbf   : > { %968 = vmatpush3.msra.mxu1 %v1233_v10  ;;  %919 = vmatpush3.msra.mxu0 %v1279_v32 }
  0xc0   : > { %969 = vmatprep.subr.mxu1 %v1134_v1  ;;  %920 = vmatprep.subr.mxu0 %v1134_v1 }
  0xc1   : > { %970 = vmatpush3.msra.mxu1 %v1235_v11  ;;  %921 = vmatpush3.msra.mxu0 %v1287_v34 }
  0xc2   : > { %922 = vmatprep.mubr.msk.f32.mxu0 %vm1135_vm0, %v1134_v1  ;;  %971 = vmatprep.subr.mxu1 %v1134_v1 }
  0xc3   : > { %923 = vmatmul.mubr.f32.vlgmr.msra.gmra.mxu0 %v249_v56  ;;  %944 = vmatprep.subr.mxu0 %v1134_v1 }
  0xc4   : > { %972 = vmatpush3.msra.mxu1 %v1237_v12  ;;  %945 = vmatpush3.msra.mxu0 %v277_v24 }
  0xc5   : > { %973 = vmatprep.subr.mxu1 %v1134_v1  ;;  %946 = vmatprep.subr.mxu0 %v1134_v1 }
  0xc6   : > { %974 = vmatpush3.msra.mxu1 %v1246_v18  ;;  %947 = vmatpush3.msra.mxu0 %v284_v25 }
  0xc7   : > { %975 = vmatprep.subr.mxu1 %v1134_v1  ;;  %948 = vmatprep.subr.mxu0 %v1134_v1 }
  0xc8   : > { %976 = vmatpush3.msra.mxu1 %v1248_v19  ;;  %949 = vmatpush3.msra.mxu0 %v291_v27 }
  0xc9   : > { %977 = vmatprep.subr.mxu1 %v1134_v1  ;;  %950 = vmatprep.subr.mxu0 %v1134_v1 }
  0xca   : > { %978 = vmatpush3.msra.mxu1 %v1260_v23  ;;  %979 = vmatprep.mubr.msk.f32.mxu1 %vm1135_vm0, %v1134_v1 }
  0xcb   : > { %951 = vmatpush3.msra.mxu0 %v298_v28  ;;  %980 = vmatmul.mubr.msk.f32.vlgmr.msra.gmra.mxu1 %vm171_vm1, %v1326_v54 }
  0xcc   : > { %952 = vmatprep.subr.mxu0 %v1134_v1  ;;  %960 = vmatprep.mubr.msk.f32.mxu0 %vm1135_vm0, %v1134_v1 }
  0xcd   : > { %953 = vmatpush3.msra.mxu0 %v305_v31 }
  0xce   : > { %954 = vmatprep.subr.mxu0 %v1134_v1 }
  0xcf   : > { %955 = vmatpush3.msra.mxu0 %v312_v38 }
  0xd0   : > { %956 = vmatprep.subr.mxu0 %v1134_v1 }
  0xd1   : > { %957 = vmatpush3.msra.mxu0 %v319_v41 }
  0xd2   : > { %958 = vmatprep.subr.mxu0 %v1134_v1 }
  0xd3   : > { %959 = vmatpush3.msra.mxu0 %v326_v44 }
  0xd4   : > { %961 = vmatmul.mubr.msk.f32.vlgmr.msra.gmra.mxu0 %vm171_vm1, %v1326_v54 }
 0x169   : > { %v365_v60 = vpop.f32.mrf.mxu1 }
 0x16b   : > { %v905_v61 = vpop.f32.mrf.mxu1 }
 0x172   : > { %v254_v62 = vpop.f32.mrf.mxu0 }
 0x173   : > { %v366_v6 = vadd.f32 %v365_v60, %v254_v62 }
 0x174   : > { %v886_v63 = vpop.f32.mrf.mxu0 }
 0x179   : > { %v534_v0 = vpop.f32.mrf.mxu1 }
 0x17b   : > { %v943_v2 = vpop.f32.mrf.mxu1 }
 0x183   : > { %v453_v3 = vpop.f32.mrf.mxu0 }
 0x184   : > { %v454_v1 = vadd.f32 %v453_v3, %v366_v6 }
 0x185   : > { %v924_v4 = vpop.f32.mrf.mxu0 }
 0x186   : > { %v535_v8 = vadd.f32 %v534_v0, %v454_v1 }
 0x18b   : > { %v708_v5 = vpop.f32.mrf.mxu1 }
 0x18d   : > { %v981_v7 = vpop.f32.mrf.mxu1 }
 0x194   : > { %v629_v9 = vpop.f32.mrf.mxu0 }
 0x195   : > { %v630_v10 = vadd.f32 %v629_v9, %v535_v8 }
 0x196   : > { %v962_v11 = vpop.f32.mrf.mxu0 }
 0x197   : > { %v709_v12 = vadd.f32 %v708_v5, %v630_v10 }
 0x199   : > { %712 = vst [vmem:[%s149_s14] sm:$0xff] %v709_v12 }
 0x19a   : > { %1077 = shalt.err (!%p1074_p0)
}
 0x19b   : > { %s1078_s27 = scalar_lea.hbm %s725_s22, 128  ;;  %s1082_s30 = scalar_lea.hbm %s1450_s2, 256 }
 0x19c   : > { %p1079_p1 = scmp.ne.s32.totalorder %s725_s22, %s1078_s27  ;;  %p1083_p4 = scmp.lt.s32.totalorder %s725_s22, %s1450_s2 }
 0x19d   : > { %p1084_p7 = scmp.lt.s32.totalorder %s1082_s30, %s1078_s27 }
 0x19e   : > { %p1080_p2 = pnand %p1079_p1, %p1190_p5 }
 0x19f   : > { %p1085_p8 = por %p1084_p7, %p1083_p4 }
 0x1a0   : > { %p1081_p3 = pneg %p1080_p2 }
 0x1a2   : > { %p1086_p6 = pnand %p1085_p8, %p1081_p3 }
 0x1a4   : > { %1089 = shalt.err (!%p1086_p6)
}
 0x1a5   : > { %986 = dma.vmem_to_hbm [thread:$0]  (%p1190_p5), %s728_s16, 128, %s725_s22, %s714_s23  }
 0x1a6 PF: > { %p998_p9 = scmp.ge.s32.totalorder %s1128_s12, 2  ;;  %s739_s5 = sand.u32 1, %s1116_s9  }
 0x1a7   : > { %p1454_p10 = scmp.ne.s32.totalorder %s1452_s20, 0  ;;  %s740_s6 = scalar_lea.sflag [#allocation4], %s739_s5 }
 0x1a9   : > { %p993_p11 = pnand %p998_p9, %p1454_p10 }
 0x1ab   : > { %p994_p12 = pneg %p993_p11 }
 0x1ad   : > { %1111 = dma.done.wait (%p994_p12), %s740_s6, 128  }
 0x1ae   : > { %1113 = vsyncadd (%p994_p12), %s740_s6, 4294967168  ;;  %p13_p13 = scmp.ge.s32.totalorder %s1177_s15, 4   ;;  %s1455_s9 = smov %s1120_s10 }
 0x1af   : > { %s1456_s10 = smov %s1124_s11  ;;  %s1457_s11 = smov %s1188_s18 }
 0x1b0   : > { %s1458_s12 = smov %s1177_s15  ;;  %15 = sbr.rel (!%p13_p13) target bundleno = 4 (0x4), region = 68 }
 0x1b5   :  { %745 = vsyncpa [#allocation3], 1 }
 0x1b6   :  { %747 = vsyncpa [#allocation3 + $0x1], 1 }
 0x1b7   :  { %748 = vsyncpa [#allocation4], 1 }
 0x1b8   :  { %750 = vsyncpa [#allocation4 + $0x1], 1 }

// kernel: tpu_custom_call.1
= control target key start
LH: loop header
LB: loop body
LE: loop exit
PB: predicated region body
PF: predicated region fallthrough
CT: control target
= control target key end

     0   :  { %7 = vsyncpa [#allocation3], 0  ;;  %s660_s0 = inlined_call_operand.vmem [shape: s32[16,1], index: 0, kind: input, shape index: {}]   ;;  %s661_s1 = inlined_call_operand.hbm [shape: f32[64,128], index: 1, kind: input, shape index: {}]   ;;  %s662_s2 = inlined_call_operand.hbm [shape: f32[16,128], index: 2, kind: output, shape index: {}]  }
   0x1   :  { %8 = vsyncpa [#allocation4], 0 }
   0x2   :  { %10 = vsyncpa [#allocation4 + $0x1], 0  ;;  %s543_s9 = smov 0   ;;  %s545_s10 = smov 0  }
   0x3   :  { %s547_s11 = smov 0   ;;  %s549_s12 = smov 0  }
   0x4 LB: > { %s564_s13 = sadd.s32 4294967295, %s519_s12   ;;  %s331_s14 = sadd.s32 4294967294, %s519_s12   ;;  %s519_s12 = sphi %s549_s12, %s670_s12   ;;  %s515_s11 = sphi %s547_s11, %s669_s11   ;;  %s511_s10 = sphi %s545_s10, %s668_s10   ;;  %s507_s9 = sphi %s543_s9, %s667_s9  }
   0x5   : > { %s568_s15 = sadd.s32 1, %s519_s12   ;;  %s70_s16 = sadd.s32 1, %s515_s11 }
   0x6   : > { %s67_s17 = ssub.s32 %s519_s12, %s568_s15  ;;  %p80_p0 = scmp.ne.s32.totalorder %s515_s11, %s511_s10 }
   0x7   : > { %p68_p1 = scmp.eq.s32.totalorder %s67_s17, 0  ;;  %p81_p2 = scmp.eq.s32.totalorder %s564_s13, 1 }
   0x8   : > { %p86_p3 = scmp.ne.s32.totalorder %s511_s10, %s507_s9  ;;  %p87_p4 = scmp.eq.s32.totalorder %s331_s14, 1 }
   0x9   : > { %s579_s18 = scalar_select %p68_p1, %s515_s11, %s70_s16  }
   0xa   : > { %p581_p5 = por %p81_p2, %p80_p0  ;;  %p585_p6 = por %p87_p4, %p86_p3 }
   0xb   : > { %p332_p7 = scmp.ge.s32.totalorder %s519_s12, 1  ;;  %p94_p8 = scmp.lt.s32.totalorder %s519_s12, 3 }
   0xc   : > { %s664_s20 = scalar_select %p585_p6, 1, 0 }
   0xd   : > { %p387_p9 = scmp.eq.s32.totalorder %s564_s13, 0  ;;  %p592_p10 = pnand %p332_p7, %p94_p8 }
   0xe   : > { %s521_s22 = smov [#allocation2]  }
   0xf   : > { %s106_s23 = sshll.u32 %s521_s22, 4  ;;  %p379_p11 = pneg %p592_p10  ;;  %s107_s23 = int_to_ptr.vmem [resolvable:$true] %s106_s23 }
  0x10   : > { %s440_s24 = scalar_lea.vmem %s107_s23, 1024  ;;  %p448_p3 = scmp.lt.s32.totalorder %s107_s23, %s107_s23 }
  0x11   : > { %p380_p12 = pnand %p387_p9, %p379_p11  ;;  %p441_p0 = scmp.ne.s32.totalorder %s107_s23, %s440_s24 }
  0x12   : > { %p449_p4 = scmp.lt.s32.totalorder %s440_s24, %s440_s24 }
  0x13   : > { %p431_p13 = pneg %p380_p12 }
  0x14   : > { %p450_p6 = por %p449_p4, %p448_p3 }
  0x15   : > { %p443_p1 = pnand %p441_p0, %p431_p13 }
  0x17   : > { %p444_p2 = pneg %p443_p1 }
  0x19   : > { %p451_p7 = pnand %p450_p6, %p444_p2 }
  0x1b   : > { %454 = shalt.err (!%p451_p7)
}
  0x1c   : > { %s522_s25 = smov 128   ;;  %s523_s26 = smov 8  }
  0x1d   : > { %382 = dma.hbm_to_vmem [thread:$0]  (!%p380_p12), %s661_s1, 1024, %s107_s23, [#allocation3], %s522_s25, %s522_s25, %s523_s26  }
  0x1e   : > { %129 = sbr.rel (%p592_p10) target bundleno = 376 (0x178), region = 28 }
  0x23   : > { %498 = dma.done.wait (%p387_p9), [#allocation3], 1024  }
  0x24   : > { %500 = vsyncadd (%p387_p9), [#allocation3], 4294966272  ;;  %p150_p8 = scmp.lt.s32.totalorder %s564_s13, 1  ;;  %v524_v0 = vmov 0   ;;  %v525_v1 = vmov 0.0   ;;  %vm526_vm0 = vmmov 0   ;;  %v155_v11 = vlaneseq }
  0x25   : > { %428 = vset.pattern.permute.xlu0 %v524_v0  ;;  %354 = vmatprep.subr.mxu0 %v525_v1  ;;  %v170_v3 = vld [vmem:[#allocation2 + $0x38] sm:$0xff]  ;;  %v169_v4 = vld [vmem:[#allocation2 + $0x30] sm:$0xff]  ;;  %v168_v5 = vld [vmem:[#allocation2 + $0x28] sm:$0xff]  ;;  %vm171_vm1 = vcmask 523264   ;;  %s147_s6 = sand.u32 1, %s511_s10   ;;  %s342_s16 = sshll.u32 %s564_s13, 7 }
  0x26   : > { %s151_s29 = scalar_select %p150_p8, %s564_s13, 1  ;;  %370 = vmatprep.mubr.msk.f32.mxu0 %vm526_vm0, %v525_v1  ;;  %355 = vmatpush3.msra.mxu0 %v170_v3  ;;  %v167_v6 = vld [vmem:[#allocation2 + $0x20] sm:$0xff]  ;;  %v166_v7 = vld [vmem:[#allocation2 + $0x18] sm:$0xff]  ;;  %v165_v8 = vld [vmem:[#allocation2 + $0x10] sm:$0xff]  ;;  %v156_v12 = vand.u32 127, %v155_v11 }
  0x27   : > { %356 = vmatprep.subr.mxu0 %v525_v1  ;;  %v164_v9 = vld [vmem:[#allocation2 + $0x8] sm:$0xff]  ;;  %v163_v10 = vld [vmem:[#allocation2] sm:$0xff]  ;;  %s337_s7 = sshll.u32 %s147_s6, 3  ;;  %s621_s22 = scalar_lea.hbm %s662_s2, %s342_s16 }
  0x28   : > { %s338_s30 = sshll.u32 %s151_s29, 3  ;;  %357 = vmatpush3.msra.mxu0 %v169_v4  ;;  %s149_s8 = scalar_lea.vmem [#allocation5], %s337_s7 }
  0x29   : > { %s153_s5 = scalar_lea.vmem %s660_s0, %s338_s30  ;;  %358 = vmatprep.subr.mxu0 %v525_v1  ;;  %s260_s14 = sshll.u32 %s149_s8, 4  ;;  %s616_s14 = int_to_ptr.vmem [resolvable:$true] %s260_s14 }
  0x2a   : > { %v154_v2 = vld [vmem:[%s153_s5] sm:$0xff]  ;;  %359 = vmatpush3.msra.mxu0 %v168_v5  ;;  %s247_s23 = scalar_lea.sflag [#allocation4], %s147_s6  ;;  %s455_s24 = scalar_lea.vmem %s616_s14, 128 }
  0x2b   : > { %158 = vperm.xlu0 %428, %v154_v2   ;;  %360 = vmatprep.subr.mxu0 %v525_v1  ;;  %p456_p6 = scmp.ne.s32.totalorder %s616_s14, %s455_s24  ;;  %s527_s13 = smov [#allocation5]  }
  0x2c   : > { %361 = vmatpush3.msra.mxu0 %v167_v6  ;;  %s459_s25 = sshll.u32 %s527_s13, 4  ;;  %s460_s25 = int_to_ptr.vmem [resolvable:$false] %s459_s25 }
  0x2d   : > { %362 = vmatprep.subr.mxu0 %v525_v1  ;;  %p457_p9 = pnand %p456_p6, %p581_p5  ;;  %s461_s26 = scalar_lea.vmem %s460_s25, 256 }
  0x2e   : > { %363 = vmatpush3.msra.mxu0 %v166_v7  ;;  %p462_p11 = scmp.lt.s32.totalorder %s616_s14, %s460_s25  ;;  %p463_p12 = scmp.lt.s32.totalorder %s461_s26, %s455_s24 }
  0x2f   : > { %364 = vmatprep.subr.mxu0 %v525_v1  ;;  %p458_p10 = pneg %p457_p9 }
  0x30   : > { %365 = vmatpush3.msra.mxu0 %v165_v8  ;;  %p464_p13 = por %p463_p12, %p462_p11 }
  0x31   : > { %366 = vmatprep.subr.mxu0 %v525_v1 }
  0x32   : > { %367 = vmatpush3.msra.mxu0 %v164_v9  ;;  %p465_p0 = pnand %p464_p13, %p458_p10 }
  0x33   : > { %368 = vmatprep.subr.mxu0 %v525_v1 }
  0x34   : > { %369 = vmatpush3.msra.mxu0 %v163_v10 }
  0xa6   : > { %v159_v13 = vpop.permute.xlu0 %158 }
  0xa7   : > { %vm160_vm2 = vcmp.eq.s32.totalorder %v159_v13, %v156_v12 }
  0xa8   : > { %v339_v14 = vsel %vm160_vm2, 1.0, %v525_v1 }
  0xa9   : > { %371 = vmatmul.mubr.msk.f32.vlgmr.msra.gmra.mxu0 %vm171_vm1, %v339_v14 }
 0x169   : > { %v241_v15 = vpop.f32.mrf.mxu0 }
 0x16a   : > { %245 = vst [vmem:[%s149_s8] sm:$0xff] %v241_v15 }
 0x16b   : > { %v372_v16 = vpop.f32.mrf.mxu0 }
 0x16c   : > { %468 = shalt.err (!%p465_p0)
}
 0x16d   : > { %s469_s27 = scalar_lea.hbm %s621_s22, 128  ;;  %s473_s30 = scalar_lea.hbm %s662_s2, 256 }
 0x16e   : > { %p470_p1 = scmp.ne.s32.totalorder %s621_s22, %s469_s27  ;;  %p474_p4 = scmp.lt.s32.totalorder %s621_s22, %s662_s2 }
 0x16f   : > { %p475_p7 = scmp.lt.s32.totalorder %s473_s30, %s469_s27 }
 0x170   : > { %p471_p2 = pnand %p470_p1, %p581_p5 }
 0x171   : > { %p476_p8 = por %p475_p7, %p474_p4 }
 0x172   : > { %p472_p3 = pneg %p471_p2 }
 0x174   : > { %p477_p6 = pnand %p476_p8, %p472_p3 }
 0x176   : > { %480 = shalt.err (!%p477_p6)
}
 0x177   : > { %377 = dma.vmem_to_hbm [thread:$0]  (%p581_p5), %s616_s14, 128, %s621_s22, %s247_s23  }
 0x178 PF: > { %p389_p9 = scmp.ge.s32.totalorder %s519_s12, 2  ;;  %s272_s5 = sand.u32 1, %s507_s9  }
 0x179   : > { %p666_p10 = scmp.ne.s32.totalorder %s664_s20, 0  ;;  %s273_s6 = scalar_lea.sflag [#allocation4], %s272_s5 }
 0x17b   : > { %p384_p11 = pnand %p389_p9, %p666_p10 }
 0x17d   : > { %p385_p12 = pneg %p384_p11 }
 0x17f   : > { %502 = dma.done.wait (%p385_p12), %s273_s6, 128  }
 0x180   : > { %504 = vsyncadd (%p385_p12), %s273_s6, 4294967168  ;;  %p13_p13 = scmp.ge.s32.totalorder %s568_s15, 4   ;;  %s667_s9 = smov %s511_s10 }
 0x181   : > { %s668_s10 = smov %s515_s11  ;;  %s669_s11 = smov %s579_s18 }
 0x182   : > { %s670_s12 = smov %s568_s15  ;;  %15 = sbr.rel (!%p13_p13) target bundleno = 4 (0x4), region = 68 }
 0x187   :  { %278 = vsyncpa [#allocation3], 1 }
 0x188   :  { %280 = vsyncpa [#allocation3 + $0x1], 1 }
 0x189   :  { %281 = vsyncpa [#allocation4], 1 }
 0x18a   :  { %283 = vsyncpa [#allocation4 + $0x1], 1 }

</bundles_post_ra>
